<compile_context>
chip_gen: v7x
topology: tpu7x:2x2x1
jax: 0.10.0
libtpu: 0.0.40
codegen_flags: <defaults>
</compile_context>

<pallas_src>
import functools

import jax
import jax.numpy as jnp
from jax import lax
from jax.experimental import pallas as pl
from jax.experimental.pallas import tpu as pltpu


# ---------------------------------------------------------------------------
# Pallas kernel: whole problem resident in VMEM, single grid step.
# ---------------------------------------------------------------------------
def lambda3d_kernel(x_ref, w_ref, rT_ref, out_ref, *, heads, kdim, vdim, batch, n):
    hk = heads * kdim
    w = w_ref[...]                                       # (h*k + k + v, C + 1)
    ones_row = jnp.ones((1, n), jnp.float32)             # bias fold (hoisted)

    # --- fused q/k/v projection (1x1x1 convs + folded BN + bias), per batch ---
    proj = []
    for b in range(batch):                               # static unroll, B = 2
        x_aug = jnp.concatenate([x_ref[b], ones_row], axis=0)        # (C+1, N)
        proj.append(jnp.dot(w, x_aug, preferred_element_type=jnp.float32))

    # --- position lambdas, fused across batches: one MXU push ---------------
    v_list = [p[hk + kdim:hk + kdim + vdim] for p in proj]           # (v, N) each
    v_stack = jnp.concatenate(v_list, axis=0)                        # (B*v, N)
    # lp_all[b*v + v', k*N + n] = sum_m v_b[v', m] * R[n, m, k]
    lp_all = jnp.dot(v_stack, rT_ref[...], preferred_element_type=jnp.float32)

    z_vk = jnp.zeros((vdim, kdim), jnp.float32)

    for b in range(batch):                               # static unroll, B = 2
        p = proj[b]
        q_b = p[0:hk]                                    # (h*k, N)
        k_b = p[hk:hk + kdim]                            # (k,   N)   (u = 1)
        v_b = v_list[b]                                  # (v,   N)

        # softmax over spatial positions, as in k.softmax(dim=-1)
        k_b = k_b - jnp.max(k_b, axis=-1, keepdims=True)
        ek = jnp.exp(k_b)
        ksoft = ek / jnp.sum(ek, axis=-1, keepdims=True)

        # content lambda (transposed): lamC_T[v, k'] = sum_m v[v, m] * ksoft[k', m]
        lamC_T = lax.dot_general(v_b, ksoft, (((1,), (1,)), ((), ())),
                                 preferred_element_type=jnp.float32)  # (v, k)

        # Fuse the h per-head content matmuls into one MXU push:
        #   kron(I_h, lamC_T) (h*v, h*k) @ q_b (h*k, N) -> (h*v, N),
        # already in output-channel row order (h v).
        block_rows = []
        for hh in range(heads):                          # tiny (v, k) blocks
            block_rows.append(jnp.concatenate(
                [lamC_T if j == hh else z_vk for j in range(heads)], axis=1))
        kron_lhs = jnp.concatenate(block_rows, axis=0)                # (h*v, h*k)
        y_c = jnp.dot(kron_lhs, q_b, preferred_element_type=jnp.float32)  # (h*v, N)

        # position part: per-position reduce over k (k on sublanes -> XLU slot).
        # NOTE: at N=64 this reshape splits 128-lane vregs; if scaled up, pick
        # n-blocks that are multiples of 128 so it becomes a free view.
        lp3 = lp_all[b * vdim:(b + 1) * vdim].reshape(vdim, kdim, n)  # (v, k, N)
        y_p_rows = []
        for hh in range(heads):                          # static unroll, h = 4
            qh = q_b[hh * kdim:(hh + 1) * kdim]          # (k, N)
            y_p_rows.append(jnp.sum(qh[None, :, :] * lp3, axis=1))    # (v, N)
        y_p = jnp.concatenate(y_p_rows, axis=0)          # (h*v, N)

        out_ref[b] = y_c + y_p                           # (out_c, N) store


# ---------------------------------------------------------------------------
# Wrapper: only free reshapes outside the kernel (no HBM transposes).
# ---------------------------------------------------------------------------
def lambda_layer_3d(x, w_aug, r_T, *, heads, kdim, vdim):
    B, C, D, H, W = x.shape
    N = D * H * W
    out_c = heads * vdim
    assert r_T.shape == (N, kdim * N)
    assert w_aug.shape[1] == C + 1

    x3 = x.reshape(B, C, N).astype(jnp.float32)          # free view

    kernel = functools.partial(lambda3d_kernel, heads=heads, kdim=kdim,
                               vdim=vdim, batch=B, n=N)
    out = pl.pallas_call(
        kernel,
        out_shape=jax.ShapeDtypeStruct((B, out_c, N), jnp.float32),
        grid_spec=pltpu.PrefetchScalarGridSpec(
            num_scalar_prefetch=0,
            grid=(1,),                                   # whole problem in VMEM
            in_specs=[
                pl.BlockSpec(x3.shape, lambda i: (0, 0, 0)),
                pl.BlockSpec(w_aug.shape, lambda i: (0, 0)),
                pl.BlockSpec(r_T.shape, lambda i: (0, 0)),
            ],
            out_specs=pl.BlockSpec((B, out_c, N), lambda i: (0, 0, 0)),
        ),
        compiler_params=pltpu.CompilerParams(dimension_semantics=("arbitrary",)),
    )(x3, w_aug, r_T)

    return out.reshape(B, out_c, D, H, W)                # free view


# ---------------------------------------------------------------------------
# Parameter construction (deterministic, mirrors LambdaLayer3d.__init__)
# ---------------------------------------------------------------------------
def compute_relative_positions(m):
    idx = jnp.arange(m)
    pos = jnp.stack(jnp.meshgrid(idx, idx, idx, indexing="ij"), axis=-1).reshape(-1, 3)
    rel = pos[None, :, :] - pos[:, None, :]              # rel[n, m] = pos[m] - pos[n]
    rel = jnp.clip(rel, -m, m) + (m - 1)
    return rel                                           # (N, N, 3)


def make_params(key, in_channels, out_channels, kdim, udim, heads, m):
    assert udim == 1, "udim > 1 not needed for this synthetic config"
    vdim = out_channels // heads
    eps = 1e-5
    keys = jax.random.split(key, 12)

    # conv weights (1x1x1), init like nn.init.normal_ with the module's stds
    wq = jax.random.normal(keys[0], (kdim * heads, in_channels), jnp.float32) * (kdim * out_channels) ** (-0.5)
    wk = jax.random.normal(keys[1], (kdim * udim, in_channels), jnp.float32) * out_channels ** (-0.5)
    wv = jax.random.normal(keys[2], (vdim * udim, in_channels), jnp.float32) * out_channels ** (-0.5)

    # BatchNorm3d (eval mode) parameters for q and v, deterministic but nontrivial
    def bn(k0, k1, k2, k3, dim):
        gamma = 1.0 + 0.1 * jax.random.normal(k0, (dim,), jnp.float32)
        beta = 0.1 * jax.random.normal(k1, (dim,), jnp.float32)
        mean = 0.1 * jax.random.normal(k2, (dim,), jnp.float32)
        var = 0.5 + jax.random.uniform(k3, (dim,), jnp.float32)
        scale = gamma / jnp.sqrt(var + eps)
        shift = beta - mean * scale
        return scale, shift

    sq, hq = bn(keys[3], keys[4], keys[5], keys[6], kdim * heads)
    sv, hv = bn(keys[7], keys[8], keys[9], keys[10], vdim * udim)

    # fold BN into conv weight / bias
    wq_eff = wq * sq[:, None]
    bq_eff = hq[:, None]                                 # (h*k, 1)
    wv_eff = wv * sv[:, None]
    bv_eff = hv[:, None]                                 # (v, 1)

    # fused projection weight [wq; wk; wv] with the bias folded as an extra column
    w_all = jnp.concatenate([wq_eff, wk, wv_eff], axis=0)             # (h*k + k + v, C)
    b_all = jnp.concatenate(
        [bq_eff, jnp.zeros((kdim * udim, 1), jnp.float32), bv_eff], axis=0)
    w_aug = jnp.concatenate([w_all, b_all], axis=1)                   # (rows, C + 1)

    # relative position embedding (nn.init.uniform_ -> U[0, 1))
    rel_lengths = 2 * m - 1
    emb = jax.random.uniform(keys[11], (rel_lengths, rel_lengths, rel_lengths, kdim, udim), jnp.float32)
    rel_pos = compute_relative_positions(m)              # (N, N, 3)
    d_, h_, w_ = rel_pos[..., 0], rel_pos[..., 1], rel_pos[..., 2]
    R = emb[d_, h_, w_, :, 0]                            # (N, N, kdim)   (u = 1)
    N = m ** 3
    # r_T[m, k*N + n] = R[n, m, k]  (lane-dense RHS for lp = v @ r_T)
    r_T = jnp.transpose(R, (1, 2, 0)).reshape(N, kdim * N)

    return w_aug, r_T, (wq_eff, bq_eff, wk, wv_eff, bv_eff, R)


# ---------------------------------------------------------------------------
# Pure-JAX reference (mirrors the PyTorch forward, global-context branch)
# ---------------------------------------------------------------------------
def reference(x, wq, bq, wk, wv, bv, R, *, heads, kdim, vdim):
    B, C, D, H, W = x.shape
    N = D * H * W
    x2 = x.reshape(B, C, N)
    q = jnp.einsum("oc,bcn->bon", wq, x2) + bq[None]
    kk = jnp.einsum("oc,bcn->bon", wk, x2)
    vv = jnp.einsum("oc,bcn->bon", wv, x2) + bv[None]
    q = q.reshape(B, heads, kdim, N)
    kk = jax.nn.softmax(kk, axis=-1)                     # (B, k, N), u = 1
    lambda_c = jnp.einsum("bkm,bvm->bkv", kk, vv)
    y_c = jnp.einsum("bhkn,bkv->bhvn", q, lambda_c)
    lambda_p = jnp.einsum("nmk,bvm->bnkv", R, vv)
    y_p = jnp.einsum("bhkn,bnkv->bhvn", q, lambda_p)
    Y = y_c + y_p
    return Y.reshape(B, heads * vdim, D, H, W)


if __name__ == "__main__":
    B, C_in, C_out = 2, 8, 16
    m = 4                      # global context size -> D = H = W = m
    kdim, udim, heads = 8, 1, 4
    vdim = C_out // heads

    key = jax.random.PRNGKey(0)
    kx, kp = jax.random.split(key)
    x = jax.random.normal(kx, (B, C_in, m, m, m), jnp.float32)

    w_aug, r_T, raw = make_params(kp, C_in, C_out, kdim, udim, heads, m)
    wq, bq, wk, wv, bv, R = raw

    out = lambda_layer_3d(x, w_aug, r_T, heads=heads, kdim=kdim, vdim=vdim)
    out = jax.block_until_ready(out)

    ref = reference(x, wq, bq, wk, wv, bv, R, heads=heads, kdim=kdim, vdim=vdim)
    assert out.shape == (B, C_out, m, m, m)
    assert jnp.allclose(out, ref, rtol=1e-4, atol=1e-4), float(jnp.max(jnp.abs(out - ref)))

    print("KERNEL_OK")
</pallas_src>

<mosaic_0001>
module attributes {stable_mosaic.version = 11 : i64} {
  func.func @lambda3d_kernel(%arg0: i32, %arg1: memref<2x8x64xf32, #tpu.memory_space<vmem>>, %arg2: memref<44x9xf32, #tpu.memory_space<vmem>>, %arg3: memref<64x512xf32, #tpu.memory_space<vmem>>, %arg4: memref<2x16x64xf32, #tpu.memory_space<vmem>>) attributes {dimension_semantics = [#tpu.dimension_semantics<arbitrary>], iteration_bounds = array<i64: 1>, scalar_prefetch = 0 : i64, scratch_operands = 0 : i64, tpu.core_type = #tpu.core_type<tc>, window_params = [{pipeline_mode = #tpu.pipeline_mode<synchronous>, transform_indices = @transform_0, window_bounds = array<i64: 2, 8, 64>}, {pipeline_mode = #tpu.pipeline_mode<synchronous>, transform_indices = @transform_1, window_bounds = array<i64: 44, 9>}, {pipeline_mode = #tpu.pipeline_mode<synchronous>, transform_indices = @transform_2, window_bounds = array<i64: 64, 512>}, {pipeline_mode = #tpu.pipeline_mode<synchronous>, transform_indices = @transform_3, window_bounds = array<i64: 2, 16, 64>}]} {
    %c0 = arith.constant 0 : index
    %c0_0 = arith.constant 0 : index
    %0 = vector.load %arg2[%c0, %c0_0] : memref<44x9xf32, #tpu.memory_space<vmem>>, vector<44x9xf32>
    %cst = arith.constant 1.000000e+00 : f32
    %1 = vector.broadcast %cst : f32 to vector<1x64xf32>
    %c0_1 = arith.constant 0 : index
    %c0_2 = arith.constant 0 : index
    %c0_3 = arith.constant 0 : index
    %2 = vector.load %arg1[%c0_1, %c0_2, %c0_3] : memref<2x8x64xf32, #tpu.memory_space<vmem>>, vector<1x8x64xf32>
    %3 = vector.shape_cast %2 : vector<1x8x64xf32> to vector<8x64xf32>
    %4 = tpu.concatenate %3, %1 in 0 : vector<8x64xf32>, vector<1x64xf32> -> vector<9x64xf32>
    %cst_4 = arith.constant dense<0.000000e+00> : vector<44x64xf32>
    %5 = tpu.matmul %0, %4, %cst_4 {dimension_numbers = #tpu.dot_dimension_numbers<[1], [0], [0], [1], [0, 0, 1, 1], [], []>} : vector<44x9xf32>, vector<9x64xf32>, vector<44x64xf32> -> vector<44x64xf32>
    %c1 = arith.constant 1 : index
    %c0_5 = arith.constant 0 : index
    %c0_6 = arith.constant 0 : index
    %6 = vector.load %arg1[%c1, %c0_5, %c0_6] : memref<2x8x64xf32, #tpu.memory_space<vmem>>, vector<1x8x64xf32>
    %7 = vector.shape_cast %6 : vector<1x8x64xf32> to vector<8x64xf32>
    %8 = tpu.concatenate %7, %1 in 0 : vector<8x64xf32>, vector<1x64xf32> -> vector<9x64xf32>
    %cst_7 = arith.constant dense<0.000000e+00> : vector<44x64xf32>
    %9 = tpu.matmul %0, %8, %cst_7 {dimension_numbers = #tpu.dot_dimension_numbers<[1], [0], [0], [1], [0, 0, 1, 1], [], []>} : vector<44x9xf32>, vector<9x64xf32>, vector<44x64xf32> -> vector<44x64xf32>
    %10 = vector.extract_strided_slice %5 {offsets = [40, 0], sizes = [4, 64], strides = [1, 1]} : vector<44x64xf32> to vector<4x64xf32>
    %11 = vector.extract_strided_slice %9 {offsets = [40, 0], sizes = [4, 64], strides = [1, 1]} : vector<44x64xf32> to vector<4x64xf32>
    %12 = tpu.concatenate %10, %11 in 0 : vector<4x64xf32>, vector<4x64xf32> -> vector<8x64xf32>
    %c0_8 = arith.constant 0 : index
    %c0_9 = arith.constant 0 : index
    %13 = vector.load %arg3[%c0_8, %c0_9] : memref<64x512xf32, #tpu.memory_space<vmem>>, vector<64x512xf32>
    %cst_10 = arith.constant dense<0.000000e+00> : vector<8x512xf32>
    %14 = tpu.matmul %12, %13, %cst_10 {dimension_numbers = #tpu.dot_dimension_numbers<[1], [0], [0], [1], [0, 0, 1, 1], [], []>} : vector<8x64xf32>, vector<64x512xf32>, vector<8x512xf32> -> vector<8x512xf32>
    %cst_11 = arith.constant 0.000000e+00 : f32
    %15 = vector.broadcast %cst_11 : f32 to vector<4x8xf32>
    %16 = vector.extract_strided_slice %5 {offsets = [0, 0], sizes = [32, 64], strides = [1, 1]} : vector<44x64xf32> to vector<32x64xf32>
    %17 = vector.extract_strided_slice %5 {offsets = [32, 0], sizes = [8, 64], strides = [1, 1]} : vector<44x64xf32> to vector<8x64xf32>
    %cst_12 = arith.constant dense<0xFF800000> : vector<8xf32>
    %18 = vector.multi_reduction <maximumf>, %17, %cst_12 [1] : vector<8x64xf32> to vector<8xf32>
    %19 = vector.shape_cast %18 : vector<8xf32> to vector<8x1xf32>
    %20 = vector.broadcast %19 : vector<8x1xf32> to vector<8x64xf32>
    %21 = arith.subf %17, %20 : vector<8x64xf32>
    %22 = math.exp %21 : vector<8x64xf32>
    %cst_13 = arith.constant dense<0.000000e+00> : vector<8xf32>
    %23 = vector.multi_reduction <add>, %22, %cst_13 [1] : vector<8x64xf32> to vector<8xf32>
    %24 = vector.shape_cast %23 : vector<8xf32> to vector<8x1xf32>
    %25 = vector.broadcast %24 : vector<8x1xf32> to vector<8x64xf32>
    %26 = arith.divf %22, %25 : vector<8x64xf32>
    %cst_14 = arith.constant dense<0.000000e+00> : vector<4x8xf32>
    %27 = tpu.matmul %10, %26, %cst_14 {dimension_numbers = #tpu.dot_dimension_numbers<[1], [1], [0], [0], [0, 0, 1, 0], [], []>} : vector<4x64xf32>, vector<8x64xf32>, vector<4x8xf32> -> vector<4x8xf32>
    %28 = tpu.concatenate %27, %15, %15, %15 in 1 : vector<4x8xf32>, vector<4x8xf32>, vector<4x8xf32>, vector<4x8xf32> -> vector<4x32xf32>
    %29 = tpu.concatenate %15, %27, %15, %15 in 1 : vector<4x8xf32>, vector<4x8xf32>, vector<4x8xf32>, vector<4x8xf32> -> vector<4x32xf32>
    %30 = tpu.concatenate %15, %15, %27, %15 in 1 : vector<4x8xf32>, vector<4x8xf32>, vector<4x8xf32>, vector<4x8xf32> -> vector<4x32xf32>
    %31 = tpu.concatenate %15, %15, %15, %27 in 1 : vector<4x8xf32>, vector<4x8xf32>, vector<4x8xf32>, vector<4x8xf32> -> vector<4x32xf32>
    %32 = tpu.concatenate %28, %29, %30, %31 in 0 : vector<4x32xf32>, vector<4x32xf32>, vector<4x32xf32>, vector<4x32xf32> -> vector<16x32xf32>
    %cst_15 = arith.constant dense<0.000000e+00> : vector<16x64xf32>
    %33 = tpu.matmul %32, %16, %cst_15 {dimension_numbers = #tpu.dot_dimension_numbers<[1], [0], [0], [1], [0, 0, 1, 1], [], []>} : vector<16x32xf32>, vector<32x64xf32>, vector<16x64xf32> -> vector<16x64xf32>
    %34 = vector.extract_strided_slice %14 {offsets = [0, 0], sizes = [4, 512], strides = [1, 1]} : vector<8x512xf32> to vector<4x512xf32>
    %35 = vector.shape_cast %34 : vector<4x512xf32> to vector<4x8x64xf32>
    %36 = vector.extract_strided_slice %16 {offsets = [0, 0], sizes = [8, 64], strides = [1, 1]} : vector<32x64xf32> to vector<8x64xf32>
    %37 = vector.shape_cast %36 : vector<8x64xf32> to vector<1x8x64xf32>
    %38 = vector.broadcast %37 : vector<1x8x64xf32> to vector<4x8x64xf32>
    %39 = arith.mulf %38, %35 : vector<4x8x64xf32>
    %cst_16 = arith.constant dense<0.000000e+00> : vector<4x64xf32>
    %40 = vector.multi_reduction <add>, %39, %cst_16 [1] : vector<4x8x64xf32> to vector<4x64xf32>
    %41 = vector.extract_strided_slice %16 {offsets = [8, 0], sizes = [8, 64], strides = [1, 1]} : vector<32x64xf32> to vector<8x64xf32>
    %42 = vector.shape_cast %41 : vector<8x64xf32> to vector<1x8x64xf32>
    %43 = vector.broadcast %42 : vector<1x8x64xf32> to vector<4x8x64xf32>
    %44 = arith.mulf %43, %35 : vector<4x8x64xf32>
    %cst_17 = arith.constant dense<0.000000e+00> : vector<4x64xf32>
    %45 = vector.multi_reduction <add>, %44, %cst_17 [1] : vector<4x8x64xf32> to vector<4x64xf32>
    %46 = vector.extract_strided_slice %16 {offsets = [16, 0], sizes = [8, 64], strides = [1, 1]} : vector<32x64xf32> to vector<8x64xf32>
    %47 = vector.shape_cast %46 : vector<8x64xf32> to vector<1x8x64xf32>
    %48 = vector.broadcast %47 : vector<1x8x64xf32> to vector<4x8x64xf32>
    %49 = arith.mulf %48, %35 : vector<4x8x64xf32>
    %cst_18 = arith.constant dense<0.000000e+00> : vector<4x64xf32>
    %50 = vector.multi_reduction <add>, %49, %cst_18 [1] : vector<4x8x64xf32> to vector<4x64xf32>
    %51 = vector.extract_strided_slice %16 {offsets = [24, 0], sizes = [8, 64], strides = [1, 1]} : vector<32x64xf32> to vector<8x64xf32>
    %52 = vector.shape_cast %51 : vector<8x64xf32> to vector<1x8x64xf32>
    %53 = vector.broadcast %52 : vector<1x8x64xf32> to vector<4x8x64xf32>
    %54 = arith.mulf %53, %35 : vector<4x8x64xf32>
    %cst_19 = arith.constant dense<0.000000e+00> : vector<4x64xf32>
    %55 = vector.multi_reduction <add>, %54, %cst_19 [1] : vector<4x8x64xf32> to vector<4x64xf32>
    %56 = tpu.concatenate %40, %45, %50, %55 in 0 : vector<4x64xf32>, vector<4x64xf32>, vector<4x64xf32>, vector<4x64xf32> -> vector<16x64xf32>
    %57 = arith.addf %33, %56 : vector<16x64xf32>
    %c0_20 = arith.constant 0 : index
    %c0_21 = arith.constant 0 : index
    %c0_22 = arith.constant 0 : index
    %58 = vector.load %arg4[%c0_20, %c0_21, %c0_22] : memref<2x16x64xf32, #tpu.memory_space<vmem>>, vector<1x16x64xf32>
    %59 = vector.shape_cast %58 : vector<1x16x64xf32> to vector<16x64xf32>
    %60 = vector.shape_cast %57 : vector<16x64xf32> to vector<1x16x64xf32>
    tpu.vector_store %arg4[%c0_20, %c0_21, %c0_22], %60 {strides = array<i32>} : memref<2x16x64xf32, #tpu.memory_space<vmem>>, vector<1x16x64xf32>,
    %61 = vector.extract_strided_slice %9 {offsets = [0, 0], sizes = [32, 64], strides = [1, 1]} : vector<44x64xf32> to vector<32x64xf32>
    %62 = vector.extract_strided_slice %9 {offsets = [32, 0], sizes = [8, 64], strides = [1, 1]} : vector<44x64xf32> to vector<8x64xf32>
    %cst_23 = arith.constant dense<0xFF800000> : vector<8xf32>
    %63 = vector.multi_reduction <maximumf>, %62, %cst_23 [1] : vector<8x64xf32> to vector<8xf32>
    %64 = vector.shape_cast %63 : vector<8xf32> to vector<8x1xf32>
    %65 = vector.broadcast %64 : vector<8x1xf32> to vector<8x64xf32>
    %66 = arith.subf %62, %65 : vector<8x64xf32>
    %67 = math.exp %66 : vector<8x64xf32>
    %cst_24 = arith.constant dense<0.000000e+00> : vector<8xf32>
    %68 = vector.multi_reduction <add>, %67, %cst_24 [1] : vector<8x64xf32> to vector<8xf32>
    %69 = vector.shape_cast %68 : vector<8xf32> to vector<8x1xf32>
    %70 = vector.broadcast %69 : vector<8x1xf32> to vector<8x64xf32>
    %71 = arith.divf %67, %70 : vector<8x64xf32>
    %cst_25 = arith.constant dense<0.000000e+00> : vector<4x8xf32>
    %72 = tpu.matmul %11, %71, %cst_25 {dimension_numbers = #tpu.dot_dimension_numbers<[1], [1], [0], [0], [0, 0, 1, 0], [], []>} : vector<4x64xf32>, vector<8x64xf32>, vector<4x8xf32> -> vector<4x8xf32>
    %73 = tpu.concatenate %72, %15, %15, %15 in 1 : vector<4x8xf32>, vector<4x8xf32>, vector<4x8xf32>, vector<4x8xf32> -> vector<4x32xf32>
    %74 = tpu.concatenate %15, %72, %15, %15 in 1 : vector<4x8xf32>, vector<4x8xf32>, vector<4x8xf32>, vector<4x8xf32> -> vector<4x32xf32>
    %75 = tpu.concatenate %15, %15, %72, %15 in 1 : vector<4x8xf32>, vector<4x8xf32>, vector<4x8xf32>, vector<4x8xf32> -> vector<4x32xf32>
    %76 = tpu.concatenate %15, %15, %15, %72 in 1 : vector<4x8xf32>, vector<4x8xf32>, vector<4x8xf32>, vector<4x8xf32> -> vector<4x32xf32>
    %77 = tpu.concatenate %73, %74, %75, %76 in 0 : vector<4x32xf32>, vector<4x32xf32>, vector<4x32xf32>, vector<4x32xf32> -> vector<16x32xf32>
    %cst_26 = arith.constant dense<0.000000e+00> : vector<16x64xf32>
    %78 = tpu.matmul %77, %61, %cst_26 {dimension_numbers = #tpu.dot_dimension_numbers<[1], [0], [0], [1], [0, 0, 1, 1], [], []>} : vector<16x32xf32>, vector<32x64xf32>, vector<16x64xf32> -> vector<16x64xf32>
    %79 = vector.extract_strided_slice %14 {offsets = [4, 0], sizes = [4, 512], strides = [1, 1]} : vector<8x512xf32> to vector<4x512xf32>
    %80 = vector.shape_cast %79 : vector<4x512xf32> to vector<4x8x64xf32>
    %81 = vector.extract_strided_slice %61 {offsets = [0, 0], sizes = [8, 64], strides = [1, 1]} : vector<32x64xf32> to vector<8x64xf32>
    %82 = vector.shape_cast %81 : vector<8x64xf32> to vector<1x8x64xf32>
    %83 = vector.broadcast %82 : vector<1x8x64xf32> to vector<4x8x64xf32>
    %84 = arith.mulf %83, %80 : vector<4x8x64xf32>
    %cst_27 = arith.constant dense<0.000000e+00> : vector<4x64xf32>
    %85 = vector.multi_reduction <add>, %84, %cst_27 [1] : vector<4x8x64xf32> to vector<4x64xf32>
    %86 = vector.extract_strided_slice %61 {offsets = [8, 0], sizes = [8, 64], strides = [1, 1]} : vector<32x64xf32> to vector<8x64xf32>
    %87 = vector.shape_cast %86 : vector<8x64xf32> to vector<1x8x64xf32>
    %88 = vector.broadcast %87 : vector<1x8x64xf32> to vector<4x8x64xf32>
    %89 = arith.mulf %88, %80 : vector<4x8x64xf32>
    %cst_28 = arith.constant dense<0.000000e+00> : vector<4x64xf32>
    %90 = vector.multi_reduction <add>, %89, %cst_28 [1] : vector<4x8x64xf32> to vector<4x64xf32>
    %91 = vector.extract_strided_slice %61 {offsets = [16, 0], sizes = [8, 64], strides = [1, 1]} : vector<32x64xf32> to vector<8x64xf32>
    %92 = vector.shape_cast %91 : vector<8x64xf32> to vector<1x8x64xf32>
    %93 = vector.broadcast %92 : vector<1x8x64xf32> to vector<4x8x64xf32>
    %94 = arith.mulf %93, %80 : vector<4x8x64xf32>
    %cst_29 = arith.constant dense<0.000000e+00> : vector<4x64xf32>
    %95 = vector.multi_reduction <add>, %94, %cst_29 [1] : vector<4x8x64xf32> to vector<4x64xf32>
    %96 = vector.extract_strided_slice %61 {offsets = [24, 0], sizes = [8, 64], strides = [1, 1]} : vector<32x64xf32> to vector<8x64xf32>
    %97 = vector.shape_cast %96 : vector<8x64xf32> to vector<1x8x64xf32>
    %98 = vector.broadcast %97 : vector<1x8x64xf32> to vector<4x8x64xf32>
    %99 = arith.mulf %98, %80 : vector<4x8x64xf32>
    %cst_30 = arith.constant dense<0.000000e+00> : vector<4x64xf32>
    %100 = vector.multi_reduction <add>, %99, %cst_30 [1] : vector<4x8x64xf32> to vector<4x64xf32>
    %101 = tpu.concatenate %85, %90, %95, %100 in 0 : vector<4x64xf32>, vector<4x64xf32>, vector<4x64xf32>, vector<4x64xf32> -> vector<16x64xf32>
    %102 = arith.addf %78, %101 : vector<16x64xf32>
    %c1_31 = arith.constant 1 : index
    %c0_32 = arith.constant 0 : index
    %c0_33 = arith.constant 0 : index
    %103 = vector.load %arg4[%c1_31, %c0_32, %c0_33] : memref<2x16x64xf32, #tpu.memory_space<vmem>>, vector<1x16x64xf32>
    %104 = vector.shape_cast %103 : vector<1x16x64xf32> to vector<16x64xf32>
    %105 = vector.shape_cast %102 : vector<16x64xf32> to vector<1x16x64xf32>
    tpu.vector_store %arg4[%c1_31, %c0_32, %c0_33], %105 {strides = array<i32>} : memref<2x16x64xf32, #tpu.memory_space<vmem>>, vector<1x16x64xf32>,
    return
  }
  func.func @transform_0(%arg0: i32) -> (i32, i32, i32) {
    %c0_i32 = arith.constant 0 : i32
    %c0_i32_0 = arith.constant 0 : i32
    %c0_i32_1 = arith.constant 0 : i32
    %c0_i32_2 = arith.constant 0 : i32
    return %c0_i32, %c0_i32_0, %c0_i32_1 : i32, i32, i32
  }
  func.func @transform_1(%arg0: i32) -> (i32, i32) {
    %c0_i32 = arith.constant 0 : i32
    %c0_i32_0 = arith.constant 0 : i32
    %c0_i32_1 = arith.constant 0 : i32
    return %c0_i32, %c0_i32_0 : i32, i32
  }
  func.func @transform_2(%arg0: i32) -> (i32, i32) {
    %c0_i32 = arith.constant 0 : i32
    %c0_i32_0 = arith.constant 0 : i32
    %c0_i32_1 = arith.constant 0 : i32
    return %c0_i32, %c0_i32_0 : i32, i32
  }
  func.func @transform_3(%arg0: i32) -> (i32, i32, i32) {
    %c0_i32 = arith.constant 0 : i32
    %c0_i32_0 = arith.constant 0 : i32
    %c0_i32_1 = arith.constant 0 : i32
    %c0_i32_2 = arith.constant 0 : i32
    return %c0_i32, %c0_i32_0, %c0_i32_1 : i32, i32, i32
  }
}

</mosaic_0001>

<bundles_post_ra>
// kernel: tpu_custom_call.1
= control target key start
LH: loop header
LB: loop body
LE: loop exit
PB: predicated region body
PF: predicated region fallthrough
CT: control target
= control target key end

     0   :  { %8 = vsyncpa [#allocation3], 0  ;;  %s1958_s0 = inlined_call_operand.vmem [shape: f32[2,8,64], index: 0, kind: input, shape index: {}]   ;;  %s1959_s1 = inlined_call_operand.vmem [shape: f32[44,9], index: 1, kind: input, shape index: {}]   ;;  %s1960_s2 = inlined_call_operand.hbm [shape: f32[64,512], index: 2, kind: input, shape index: {}]   ;;  %s1961_s3 = inlined_call_operand.hbm [shape: f32[2,16,64], index: 3, kind: output, shape index: {}]  }
   0x1   :  { %9 = vsyncpa [#allocation4], 0  ;;  %s1593_s12 = smov [#allocation2]   ;;  %s1545_s16 = scalar_lea.hbm %s1960_s2, 4096 }
   0x2   :  { %s19_s13 = sshll.u32 %s1593_s12, 4  ;;  %p1546_p0 = scmp.ne.s32.totalorder %s1960_s2, %s1545_s16  ;;  %s20_s13 = int_to_ptr.vmem [resolvable:$true] %s19_s13 }
   0x3   :  { %p1549_p1 = scmp.lt.u32.totalorder %s1545_s16, %s1960_s2 }
   0x5   :  { %p1551_p2 = pnand %p1549_p1, %p1546_p0 }
   0x7   :  { %1554 = shalt.err (!%p1551_p2)
}
   0x8   :  { %s1555_s21 = scalar_lea.vmem %s20_s13, 4096  ;;  %p1560_p4 = scmp.lt.s32.totalorder %s20_s13, %s20_s13 }
   0x9   :  { %p1556_p3 = scmp.ne.s32.totalorder %s20_s13, %s1555_s21  ;;  %p1561_p5 = scmp.lt.s32.totalorder %s1555_s21, %s1555_s21 }
   0xb   :  { %p1562_p6 = por %p1561_p5, %p1560_p4 }
   0xd   :  { %p1563_p7 = pnand %p1562_p6, %p1556_p3 }
   0xf   :  { %1566 = shalt.err (!%p1563_p7)
}
  0x10   :  { %s1594_s22 = smov 512   ;;  %s1595_s23 = smov 32  }
  0x11   :  { %25 = dma.hbm_to_vmem [thread:$0]  %s1960_s2, 4096, %s20_s13, [#allocation3], %s1594_s22, %s1594_s22, %s1595_s23  }
  0x12   :  { %1589 = dma.done.wait [#allocation3], 4096  }
  0x13   :  { %1590 = vsyncadd [#allocation3], 4294963200  ;;  %vm55_vm0 = vcmask 1040384   ;;  %vm36_vm1 = vcmask 72704   ;;  %vm1596_vm2 = vmmov 1   ;;  %v35_v1 = vld [vmem:[%s1958_s0] sm:$0xff] }
  0x14   :  { %vm1640_vm3 = vmpackc.low %vm55_vm0, %vm1596_vm2  ;;  %v1354_v2 = vld [vmem:[%s1958_s0 + $0x8] sm:$0xff]  ;;  %v29_v3 = vld [vmem:[%s1959_s1] sm:$0xff]  ;;  %v1597_v4 = vmov 1.0   ;;  %v1598_v60 = vmov 0.0   ;;  %vm288_vm4 = vcmask 523264   ;;  %vm254_vm5 = vcmask 1043456  }
  0x15   :  { %v1462_v5 = vpack.c.bf16 %v1597_v4, %v35_v1  ;;  %v1468_v6 = vpack.c.bf16 %v1597_v4, %v1354_v2  ;;  %1408 = vmatprep.mubr.msk.f32.mxu0 %vm36_vm1, %v29_v3  ;;  %1421 = vmatprep.mubr.msk.f32.mxu1 %vm36_vm1, %v29_v3  ;;  %v30_v7 = vld [vmem:[%s1959_s1 + $0x8] sm:$0xff]  ;;  %v259_v10 = vld [vmem:[#allocation2 + $0x18] sm:$0xff]  ;;  %v256_v14 = vld [vmem:[#allocation2] sm:$0xff]  ;;  %vm1599_vm6 = vmmov 0   ;;  %s1601_s13 = smov 16   ;;  %s1602_s14 = smov 64  }
  0x16   :  { %v257_v8 = vld [vmem:[#allocation2 + $0x8] sm:$0xff]  ;;  %v263_v11 = vld [vmem:[#allocation2 + $0x38] sm:$0xff]  ;;  %v260_v15 = vld [vmem:[#allocation2 + $0x20] sm:$0xff]  ;;  %s1603_s15 = smov 24   ;;  %vm521_vm7 = vcmask 64512   ;;  %vm523_vm8 = vcmask 130048  }
  0x17   :  { %1464 = vmatprep.subr.msk.bf16.mxu0 %vm1640_vm3, %v1462_v5  ;;  %1470 = vmatprep.subr.msk.bf16.mxu1 %vm1640_vm3, %v1468_v6  ;;  %v261_v9 = vld [vmem:[#allocation2 + $0x28] sm:$0xff]  ;;  %v1490_v13 = vpack.c.bf16 %v263_v11, %v259_v10  ;;  %v258_v16 = vld [vmem:[#allocation2 + $0x10] sm:$0xff]  ;;  %v1476_v18 = vpack.c.bf16 %v260_v15, %v256_v14  ;;  %v32_v21 = vld [vmem:[%s1959_s1 + $0x18] sm:$0xff]  ;;  %vm525_vm9 = vcmask 195584   ;;  %vm803_vm10 = vcmask 261120   ;;  %s1606_s16 = smov [#allocation5]  }
  0x18   :  { %1467 = vmatpush3.bf16.msk.msra.mxu0 %vm1640_vm3, %v1462_v5  ;;  %1473 = vmatpush3.bf16.msk.msra.mxu1 %vm1640_vm3, %v1468_v6  ;;  %v1474_v12 = vpack.c.bf16 %v261_v9, %v257_v8  ;;  %v31_v17 = vld [vmem:[%s1959_s1 + $0x10] sm:$0xff]  ;;  %v33_v22 = vld [vmem:[%s1959_s1 + $0x20] sm:$0xff]  ;;  %v34_v23 = vld [vmem:[%s1959_s1 + $0x28] sm:$0xf]  ;;  %s1600_s1 = smov 8   ;;  %vm767_vm11 = vcmask 1041409  }
  0x19   :  { %v262_v19 = vld [vmem:[#allocation2 + $0x30] sm:$0xff]  ;;  %1491 = vmatprep.subr.bf16.mxu1 %v1490_v13  ;;  %v265_v24 = vld [vmem:[#allocation2 + $0x48] sm:$0xff]  ;;  %v267_v26 = vld [vmem:[#allocation2 + $0x58] sm:$0xff]  ;;  %vm769_vm12 = vcmask 1042434   ;;  %vm771_vm13 = vcmask 1043459   ;;  %vm778_vm14 = vcmask 1045509  }
  0x1a   :  { %1475 = vmatprep.subr.bf16.mxu0 %v1474_v12  ;;  %v1492_v20 = vpack.c.bf16 %v262_v19, %v258_v16  ;;  %v269_v25 = vld [vmem:[#allocation2 + $0x68] sm:$0xff]  ;;  %v271_v28 = vld [vmem:[#allocation2 + $0x78] sm:$0xff]  ;;  %v264_v29 = vld [vmem:[#allocation2 + $0x40] sm:$0xff]  ;;  %vm780_vm15 = vcmask 1046534   ;;  %vm782_vm0 = vcmask 1047559   ;;  %s1335_s17 = sshll.u32 %s1606_s16, 4  ;;  %s1336_s17 = int_to_ptr.vmem [resolvable:$true] %s1335_s17 }
  0x1b   :  { %1409 = vmatmul.mubr.msk.f32.vlgmr.msra.gmra.mrb[0].mxu0 %vm36_vm1, %v30_v7  ;;  %1422 = vmatmul.mubr.msk.f32.vlgmr.msra.gmra.mrb[0].mxu1 %vm36_vm1, %v30_v7  ;;  %v1478_v27 = vpack.c.bf16 %v269_v25, %v265_v24  ;;  %v268_v30 = vld [vmem:[#allocation2 + $0x60] sm:$0xff]  ;;  %v1494_v31 = vpack.c.bf16 %v271_v28, %v267_v26  ;;  %v266_v33 = vld [vmem:[#allocation2 + $0x50] sm:$0xff]  ;;  %v273_v36 = vld [vmem:[#allocation2 + $0x88] sm:$0xff]  ;;  %s1567_s18 = scalar_lea.vmem %s1336_s17, 512  ;;  %p1572_p9 = scmp.lt.s32.totalorder %s1336_s17, %s1336_s17 }
  0x1c   :  { %1411 = vmatprep.mubr.msk.f32.mxu0 %vm36_vm1, %v31_v17  ;;  %1424 = vmatprep.mubr.msk.f32.mxu1 %vm36_vm1, %v31_v17  ;;  %v1480_v32 = vpack.c.bf16 %v268_v30, %v264_v29  ;;  %v270_v34 = vld [vmem:[#allocation2 + $0x70] sm:$0xff]  ;;  %v277_v37 = vld [vmem:[#allocation2 + $0xa8] sm:$0xff]  ;;  %v275_v38 = vld [vmem:[#allocation2 + $0x98] sm:$0xff]  ;;  %p1568_p8 = scmp.ne.s32.totalorder %s1336_s17, %s1567_s18  ;;  %p1573_p10 = scmp.lt.s32.totalorder %s1567_s18, %s1567_s18 }
  0x1d   :  { %1477 = vmatpush1.bf16.msra.mxu0 %v1476_v18  ;;  %1493 = vmatpush1.bf16.msra.mxu1 %v1492_v20  ;;  %v1496_v35 = vpack.c.bf16 %v270_v34, %v266_v33  ;;  %v1482_v39 = vpack.c.bf16 %v277_v37, %v273_v36  ;;  %v279_v40 = vld [vmem:[#allocation2 + $0xb8] sm:$0xff]  ;;  %v272_v41 = vld [vmem:[#allocation2 + $0x80] sm:$0xff]  ;;  %v274_v45 = vld [vmem:[#allocation2 + $0x90] sm:$0xff] }
  0x1e   :  { %1479 = vmatprep.subr.bf16.mxu0 %v1478_v27  ;;  %1495 = vmatprep.subr.bf16.mxu1 %v1494_v31  ;;  %v276_v42 = vld [vmem:[#allocation2 + $0xa0] sm:$0xff]  ;;  %v1498_v43 = vpack.c.bf16 %v279_v40, %v275_v38  ;;  %v278_v46 = vld [vmem:[#allocation2 + $0xb0] sm:$0xff]  ;;  %v281_v48 = vld [vmem:[#allocation2 + $0xc8] sm:$0xff]  ;;  %p1574_p11 = por %p1573_p10, %p1572_p9 }
  0x1f   :  { %1412 = vmatmul.mubr.msk.f32.gmra.mrb[2].mxu0 %vm36_vm1, %v32_v21  ;;  %1425 = vmatmul.mubr.msk.f32.gmra.mrb[2].mxu1 %vm36_vm1, %v32_v21  ;;  %v1484_v44 = vpack.c.bf16 %v276_v42, %v272_v41  ;;  %v1500_v47 = vpack.c.bf16 %v278_v46, %v274_v45  ;;  %v285_v49 = vld [vmem:[#allocation2 + $0xe8] sm:$0xff]  ;;  %v283_v50 = vld [vmem:[#allocation2 + $0xd8] sm:$0xff]  ;;  %v280_v53 = vld [vmem:[#allocation2 + $0xc0] sm:$0xff] }
  0x20   :  { %1414 = vmatprep.mubr.msk.f32.mxu0 %vm36_vm1, %v33_v22  ;;  %1427 = vmatprep.mubr.msk.f32.mxu1 %vm36_vm1, %v33_v22  ;;  %v1486_v51 = vpack.c.bf16 %v285_v49, %v281_v48  ;;  %v287_v52 = vld [vmem:[#allocation2 + $0xf8] sm:$0xff]  ;;  %v284_v54 = vld [vmem:[#allocation2 + $0xe0] sm:$0xff]  ;;  %v282_v57 = vld [vmem:[#allocation2 + $0xd0] sm:$0xff]  ;;  %p1575_p12 = pnand %p1574_p11, %p1568_p8 }
  0x21   :  { %1481 = vmatpush1.bf16.msra.mxu0 %v1480_v32  ;;  %1497 = vmatpush1.bf16.msra.mxu1 %v1496_v35  ;;  %v1502_v55 = vpack.c.bf16 %v287_v52, %v283_v50  ;;  %v1488_v56 = vpack.c.bf16 %v284_v54, %v280_v53  ;;  %v286_v58 = vld [vmem:[#allocation2 + $0xf0] sm:$0xff] }
  0x22   :  { %1483 = vmatprep.subr.bf16.mxu0 %v1482_v39  ;;  %1499 = vmatprep.subr.bf16.mxu1 %v1498_v43  ;;  %v1504_v59 = vpack.c.bf16 %v286_v58, %v282_v57 }
  0x23   :  { %1415 = vmatmul.mubr.msk.f32.gmra.mrb[4].mxu0 %vm36_vm1, %v34_v23  ;;  %1428 = vmatmul.mubr.msk.f32.gmra.mrb[4].mxu1 %vm36_vm1, %v34_v23 }
  0x24   :  { %356 = vmatprep.mubr.f32.mxu0 %v1598_v60  ;;  %427 = vmatprep.mubr.f32.mxu1 %v1598_v60 }
  0x25   :  { %1485 = vmatpush1.bf16.msra.mxu0 %v1484_v44  ;;  %1501 = vmatpush1.bf16.msra.mxu1 %v1500_v47 }
  0x26   :  { %1487 = vmatprep.subr.bf16.mxu0 %v1486_v51  ;;  %1503 = vmatprep.subr.bf16.mxu1 %v1502_v55 }
  0x29   :  { %1489 = vmatpush1.bf16.msra.mxu0 %v1488_v56  ;;  %1505 = vmatpush1.bf16.msra.mxu1 %v1504_v59 }
  0x2a   :  { %1430 = vmatprep.subr.mxu1 %v1598_v60  ;;  %1446 = vmatprep.subr.mxu0 %v1598_v60 }
  0xee   :  { %v1688_v61 = vpop.f32.mrb[0].mxu0  ;;  %v1690_v62 = vpop.f32.mrb[0].mxu1 }
  0xef   :  { %v1692_v63 = vpop.f32.mrb[1].mxu0  ;;  %v1694_v0 = vpop.f32.mrb[1].mxu1 }
  0xf0   :  { %v1506_v1 = vpack.c.bf16 %v1688_v61, %v1692_v63  ;;  %v1700_v2 = vpack.c.bf16 %v1690_v62, %v1694_v0 }
  0xf2   :  { %v1702_v3 = vpop.f32.mrb[2].mxu0  ;;  %v1704_v4 = vpop.f32.mrb[2].mxu1 }
  0xf3   :  { %v1706_v5 = vpop.f32.mrb[3].mxu0  ;;  %v1708_v6 = vpop.f32.mrb[3].mxu1 }
  0xf4   :  { %v1510_v7 = vpack.c.bf16 %v1702_v3, %v1706_v5  ;;  %v1518_v8 = vpack.c.bf16 %v1704_v4, %v1708_v6 }
  0xf6   :  { %v1416_v9 = vpop.f32.mrb[4].mxu0  ;;  %v1429_v10 = vpop.f32.mrb[4].mxu1 }
  0xf7   :  { %v252_v11 = vrot.slane %v1429_v10, 4  ;;  %v145_v12 = vpop.f32.mrb[5].mxu0  ;;  %v242_v13 = vpop.f32.mrb[5].mxu1 }
  0xf8   :  { %v434_v14 = vsel %vm288_vm4, %v145_v12, -inf  ;;  %v887_v16 = vsel %vm288_vm4, %v242_v13, -inf }
  0xf9   :  { %v255_v15 = vsel %vm254_vm5, %v1416_v9, %v252_v11  ;;  %435 = vmax.xlane.f32.xlu0 %v434_v14 }
  0xfa   :  { %1362 = vmatmul.mubr.msk.f32.vlgmr.msra.gmra.mrb[6].mxu0 %vm288_vm4, %v255_v15  ;;  %1363 = vmatmul.mubr.msk.f32.vlgmr.msra.gmra.mrb[6].mxu1 %vm288_vm4, %v255_v15 }
  0xfb   :  { %1432 = vmatprep.mubr.msk.f32.mxu1 %vm1599_vm6, %v1598_v60  ;;  %1448 = vmatprep.mubr.msk.f32.mxu0 %vm1599_vm6, %v1598_v60 }
  0xfd   :  { %888 = vmax.xlane.f32.xlu0 %v887_v16 }
 0x186   :  { %v436_v17 = vpop.xlane.xlu0 %435 }
 0x187   :  { %v437_v18 = vsub.f32 %v145_v12, %v436_v17 }
 0x189   :  { %v438_v19 = vmul.f32 1.442695, %v437_v18 }
 0x18a   :  { %v889_v20 = vpop.xlane.xlu0 %888 }
 0x18b   :  { %1537 = vpow2.f32 %v438_v19  ;;  %v890_v21 = vsub.f32 %v242_v13, %v889_v20  ;;  %v1604_v19 = vmov 1983009808  }
 0x18c   :  { %v569_v20 = vunpack.c.l.s4 %v1604_v19 }
 0x18d   :  { %v891_v22 = vmul.f32 1.442695, %v890_v21  ;;  %v571_v21 = vlaneseq }
 0x18f   :  { %1539 = vpow2.f32 %v891_v22 }
 0x195   :  { %v1538_v23 = vpop.eup %1537 }
 0x196   :  { %v440_v24 = vsel %vm288_vm4, %v1538_v23, 0.0 }
 0x197   :  { %441 = vadd.xlane.f32.xlu1 %v440_v24  ;;  %v570_v24 = vunpack.c.0.s8 %v569_v20 }
 0x199   :  { %v1540_v25 = vpop.eup %1539 }
 0x19a   :  { %v893_v26 = vsel %vm288_vm4, %v1540_v25, 0.0 }
 0x19b   :  { %894 = vadd.xlane.f32.xlu1 %v893_v26 }
 0x1cd   :  { %v1721_v27 = vpop.f32.mrb[6].mxu0  ;;  %v1723_v28 = vpop.f32.mrb[6].mxu1 }
 0x1ce   :  { %v1000_v29 = vrot.slane %v1721_v27, 4  ;;  %v1004_v30 = vrot.slane %v1723_v28, 4  ;;  %v1727_v31 = vpop.f32.mrb[7].mxu0  ;;  %v1729_v32 = vpop.f32.mrb[7].mxu1 }
 0x1cf   :  { %v567_v33 = vcombine.low %v1721_v27, %v1727_v31  ;;  %v1002_v34 = vrot.slane %v1727_v31, 4  ;;  %v583_v35 = vcombine.low %v1723_v28, %v1729_v32  ;;  %v1006_v36 = vrot.slane %v1729_v32, 4 }
 0x1d1   :  { %v1737_v37 = vcombine.low %v1000_v29, %v1002_v34  ;;  %v1739_v38 = vcombine.low %v1004_v30, %v1006_v36 }
 0x224   :  { %v442_v39 = vpop.xlane.xlu1 %441 }
 0x225   :  { %1541 = vrcp.f32 %v442_v39  ;;  %v1605_v39 = vmov 1934713408  }
 0x228   :  { %v895_v40 = vpop.xlane.xlu1 %894 }
 0x229   :  { %1543 = vrcp.f32 %v895_v40  ;;  %v602_v40 = vunpack.c.l.s4 %v1605_v39 }
 0x22f   :  { %v1542_v41 = vpop.eup %1541 }
 0x230   :  { %v444_v42 = vmul.f32 %v1542_v41, %v1538_v23 }
 0x232   :  { %1431 = vmatpush3.xpose.msk.msra.mxu1 %vm288_vm4, %v444_v42 }
 0x233   :  { %v1544_v43 = vpop.eup %1543  ;;  %1507 = vmatprep.subr.bf16.mxu1 %v1506_v1 }
 0x234   :  { %v897_v44 = vmul.f32 %v1544_v43, %v1540_v25  ;;  %v572_v25 = vshrl.u32 %v571_v21, 7 }
 0x235   :  { %1433 = vmatmul.mubr.msk.f32.vlgmr.msra.gmra.mrb[8].mxu1 %vm288_vm4, %v1416_v9 }
 0x236   :  { %1509 = vmatpush3.bf16.msra.mxu1 %v1506_v1  ;;  %1447 = vmatpush3.xpose.msk.msra.mxu0 %vm288_vm4, %v897_v44  ;;  %v573_v42 = vsub.s32 %v570_v24, %v572_v25 }
 0x237   :  { %1511 = vmatprep.subr.bf16.mxu1 %v1510_v7  ;;  %1515 = vmatprep.subr.bf16.mxu0 %v1700_v2 }
 0x239   :  { %1449 = vmatmul.mubr.msk.f32.vlgmr.msra.gmra.mrb[8].mxu0 %vm288_vm4, %v1429_v10 }
 0x23a   :  { %1513 = vmatpush3.bf16.msra.mxu1 %v1510_v7  ;;  %1517 = vmatpush3.bf16.msra.mxu0 %v1700_v2 }
 0x23b   :  { %1519 = vmatprep.subr.bf16.mxu0 %v1518_v8 }
 0x23e   :  { %1521 = vmatpush3.bf16.msra.mxu0 %v1518_v8 }
 0x308   :  { %v517_v45 = vpop.f32.mrb[8].mxu1 }
 0x309   :  { %528 = vrot.lane.b32.xlu0 %v517_v45, %s1600_s1  ;;  %v1434_v46 = vpop.f32.mrb[9].mxu1  ;;  %v522_v49 = vsel %vm521_vm7, %v517_v45, 0.0 }
 0x30a   :  { %v524_v53 = vsel %vm523_vm8, %v522_v49, 0.0 }
 0x30b   :  { %v526_v60 = vsel %vm525_vm9, %v524_v53, 0.0 }
 0x30c   :  { %v969_v47 = vpop.f32.mrb[8].mxu0 }
 0x30d   :  { %534 = vrot.lane.b32.xlu0 %v517_v45, %s1601_s13  ;;  %977 = vrot.lane.b32.xlu1 %v969_v47, %s1600_s1  ;;  %v1450_v48 = vpop.f32.mrb[9].mxu0  ;;  %v973_v55 = vsel %vm521_vm7, %v969_v47, 0.0 }
 0x30e   :  { %v974_v7 = vsel %vm523_vm8, %v973_v55, 0.0 }
 0x30f   :  { %v975_v13 = vsel %vm525_vm9, %v974_v7, 0.0  ;;  %v1039_v7 = vrot.slane %v1739_v38, %v573_v42 }
 0x311   :  { %552 = vrot.lane.b32.xlu0 %v1721_v27, %s1602_s14  ;;  %539 = vrot.lane.b32.xlu1 %v517_v45, %s1603_s15 }
 0x315   :  { %560 = vrot.lane.b32.xlu0 %v1723_v28, %s1602_s14  ;;  %988 = vrot.lane.b32.xlu1 %v969_v47, %s1603_s15 }
 0x319   :  { %983 = vrot.lane.b32.xlu1 %v969_v47, %s1601_s13  ;;  %v603_v47 = vunpack.c.0.s8 %v602_v40 }
 0x31b   :  { %v606_v55 = vsub.s32 %v603_v47, %v572_v25 }
 0x31d   :  { %556 = vrot.lane.b32.xlu1 %v1727_v31, %s1602_s14 }
 0x321   :  { %564 = vrot.lane.b32.xlu1 %v1729_v32, %s1602_s14 }
 0x37b   :  { %v529_v50 = vpop.permute.xlu0 %528 }
 0x37c   :  { %v531_v51 = vsel %vm521_vm7, 0.0, %v529_v50 }
 0x37d   :  { %v532_v52 = vsel %vm523_vm8, %v531_v51, 0.0  ;;  %v574_v51 = vrot.slane %v567_v33, %v573_v42 }
 0x37e   :  { %v533_v54 = vsel %vm525_vm9, %v532_v52, 0.0 }
 0x37f   :  { %v544_v56 = vrot.slane %v533_v54, 4  ;;  %v978_v57 = vpop.permute.xlu1 %977  ;;  %v535_v58 = vpop.permute.xlu0 %534 }
 0x380   :  { %v980_v59 = vsel %vm521_vm7, 0.0, %v978_v57  ;;  %v537_v9 = vsel %vm523_vm8, 0.0, %v535_v58 }
 0x381   :  { %v981_v1 = vsel %vm523_vm8, %v980_v59, 0.0  ;;  %v549_v2 = vsel %vm254_vm5, %v526_v60, %v544_v56  ;;  %v538_v16 = vsel %vm525_vm9, %v537_v9, 0.0  ;;  %v590_v59 = vrot.slane %v583_v35, %v573_v42 }
 0x382   :  { %v982_v8 = vsel %vm525_vm9, %v981_v1, 0.0  ;;  %1443 = vmatprep.mubr.msk.f32.mxu1 %vm803_vm10, %v549_v2  ;;  %v1023_v2 = vrot.slane %v1737_v37, %v573_v42 }
 0x383   :  { %v993_v10 = vrot.slane %v982_v8, 4  ;;  %v540_v11 = vpop.permute.xlu1 %539  ;;  %v553_v26 = vpop.permute.xlu0 %552 }
 0x384   :  { %v542_v12 = vsel %vm525_vm9, 0.0, %v540_v11  ;;  %v1001_v43 = vrot.slane %v553_v26, 4 }
 0x385   :  { %v547_v14 = vrot.slane %v542_v12, 4  ;;  %v998_v15 = vsel %vm254_vm5, %v975_v13, %v993_v10 }
 0x386   :  { %1459 = vmatprep.mubr.msk.f32.mxu0 %vm803_vm10, %v998_v15 }
 0x387   :  { %v550_v17 = vsel %vm254_vm5, %v538_v16, %v547_v14  ;;  %v989_v18 = vpop.permute.xlu1 %988  ;;  %v561_v46 = vpop.permute.xlu0 %560 }
 0x388   :  { %1444 = vmatmul.mubr.msk.f32.vlgmr.msra.gmra.mrb[10].mxu1 %vm803_vm10, %v550_v17  ;;  %v991_v22 = vsel %vm525_vm9, 0.0, %v989_v18  ;;  %v1005_v53 = vrot.slane %v561_v46, 4 }
 0x389   :  { %v996_v29 = vrot.slane %v991_v22, 4 }
 0x38b   :  { %v984_v23 = vpop.permute.xlu1 %983 }
 0x38c   :  { %v986_v30 = vsel %vm523_vm8, 0.0, %v984_v23 }
 0x38d   :  { %v987_v34 = vsel %vm525_vm9, %v986_v30, 0.0 }
 0x38e   :  { %v999_v36 = vsel %vm254_vm5, %v987_v34, %v996_v29 }
 0x38f   :  { %v557_v41 = vpop.permute.xlu1 %556  ;;  %1460 = vmatmul.mubr.msk.f32.vlgmr.msra.gmra.mrb[10].mxu0 %vm803_vm10, %v999_v36 }
 0x390   :  { %v575_v44 = vcombine.low %v553_v26, %v557_v41  ;;  %v1003_v45 = vrot.slane %v557_v41, 4 }
 0x392   :  { %v582_v48 = vrot.slane %v575_v44, %v573_v42  ;;  %v1024_v49 = vcombine.low %v1001_v43, %v1003_v45 }
 0x393   :  { %v565_v50 = vpop.permute.xlu1 %564 }
 0x394   :  { %v591_v52 = vcombine.low %v561_v46, %v565_v50  ;;  %v1007_v54 = vrot.slane %v565_v50, 4  ;;  %v599_v56 = vcombine.low %v574_v51, %v582_v48  ;;  %v600_v57 = vcombine.high %v574_v51, %v582_v48 }
 0x395   :  { %v1031_v58 = vrot.slane %v1024_v49, %v573_v42 }
 0x396   :  { %v598_v60 = vrot.slane %v591_v52, %v573_v42  ;;  %v1040_v1 = vcombine.low %v1005_v53, %v1007_v54  ;;  %v607_v33 = vrot.slane %v599_v56, %v606_v55  ;;  %v614_v9 = vrot.slane %v600_v57, %v606_v55 }
 0x397   :  { %v1048_v10 = vcombine.low %v1023_v2, %v1031_v58  ;;  %v1049_v11 = vcombine.high %v1023_v2, %v1031_v58 }
 0x398   :  { %v615_v8 = vcombine.low %v590_v59, %v598_v60  ;;  %v616_v27 = vcombine.high %v590_v59, %v598_v60  ;;  %v1047_v31 = vrot.slane %v1040_v1, %v573_v42 }
 0x399   :  { %v1056_v17 = vrot.slane %v1048_v10, %v606_v55  ;;  %v1063_v37 = vrot.slane %v1049_v11, %v606_v55 }
 0x39a   :  { %v623_v12 = vrot.slane %v615_v8, %v606_v55  ;;  %v630_v13 = vrot.slane %v616_v27, %v606_v55  ;;  %v1064_v14 = vcombine.low %v1039_v7, %v1047_v31  ;;  %v1065_v15 = vcombine.high %v1039_v7, %v1047_v31 }
 0x39c   :  { %v631_v16 = vcombine.low %v607_v33, %v623_v12  ;;  %v632_v28 = vcombine.high %v607_v33, %v623_v12  ;;  %v633_v32 = vcombine.low %v614_v9, %v630_v13  ;;  %v1783_v35 = vcombine.high %v614_v9, %v630_v13 }
 0x39d   :  { %v1072_v18 = vrot.slane %v1064_v14, %v606_v55  ;;  %v1079_v38 = vrot.slane %v1065_v15, %v606_v55 }
 0x39e   :  { %v1786_v19 = vmul.f32 %v631_v16, %v1692_v63  ;;  %v1789_v20 = vmul.f32 %v632_v28, %v1692_v63  ;;  %v1792_v21 = vmul.f32 %v633_v32, %v1692_v63  ;;  %v1795_v22 = vmul.f32 %v1688_v61, %v631_v16 }
 0x39f   :  { %v1798_v23 = vmul.f32 %v1688_v61, %v632_v28  ;;  %v1801_v24 = vmul.f32 %v1688_v61, %v633_v32  ;;  %v699_v25 = vmul.f32 %v631_v16, %v1706_v5  ;;  %v700_v26 = vmul.f32 %v632_v28, %v1706_v5 }
 0x3a0   :  { %v701_v29 = vmul.f32 %v633_v32, %v1706_v5  ;;  %v731_v30 = vmul.f32 %v1702_v3, %v631_v16  ;;  %v732_v34 = vmul.f32 %v1702_v3, %v632_v28  ;;  %v733_v36 = vmul.f32 %v1702_v3, %v633_v32 }
 0x3a1   :  { %v1080_v39 = vcombine.low %v1056_v17, %v1072_v18  ;;  %v1081_v40 = vcombine.high %v1056_v17, %v1072_v18  ;;  %v1809_v41 = vcombine.low %v1063_v37, %v1079_v38  ;;  %v1811_v42 = vcombine.high %v1063_v37, %v1079_v38 }
 0x3a2   :  { %v702_v43 = vmul.f32 %v1783_v35, %v1706_v5  ;;  %v703_v44 = vsel %vm288_vm4, %v699_v25, 0.0  ;;  %v710_v45 = vsel %vm288_vm4, %v700_v26, 0.0  ;;  %v717_v46 = vsel %vm288_vm4, %v701_v29, 0.0 }
 0x3a3   :  { %v1819_v47 = vmul.f32 %v1080_v39, %v1694_v0  ;;  %v1822_v48 = vmul.f32 %v1081_v40, %v1694_v0  ;;  %v1825_v49 = vmul.f32 %v1690_v62, %v1080_v39  ;;  %v1828_v50 = vmul.f32 %v1690_v62, %v1081_v40 }
 0x3a4   :  { %v1831_v5 = vmul.f32 %v1080_v39, %v1708_v6  ;;  %v1834_v51 = vmul.f32 %v1081_v40, %v1708_v6  ;;  %v1837_v52 = vmul.f32 %v1704_v4, %v1080_v39  ;;  %v1840_v53 = vmul.f32 %v1704_v4, %v1081_v40 }
 0x3a5   :  { %v704_v54 = vrot.slane %v703_v44, 4  ;;  %v711_v55 = vrot.slane %v710_v45, 4  ;;  %v718_v56 = vrot.slane %v717_v46, 4  ;;  %v724_v57 = vsel %vm288_vm4, %v702_v43, 0.0 }
 0x3a6   :  { %v725_v58 = vrot.slane %v724_v57, 4  ;;  %v734_v59 = vmul.f32 %v1702_v3, %v1783_v35  ;;  %v735_v60 = vsel %vm288_vm4, %v731_v30, 0.0  ;;  %v742_v1 = vsel %vm288_vm4, %v732_v34, 0.0 }
 0x3a7   :  { %v705_v2 = vadd.f32 %v704_v54, %v703_v44  ;;  %v712_v7 = vadd.f32 %v711_v55, %v710_v45  ;;  %v719_v8 = vadd.f32 %v718_v56, %v717_v46  ;;  %v736_v27 = vrot.slane %v735_v60, 4 }
 0x3a8   :  { %v726_v31 = vadd.f32 %v725_v58, %v724_v57  ;;  %v743_v33 = vrot.slane %v742_v1, 4  ;;  %v749_v9 = vsel %vm288_vm4, %v733_v36, 0.0  ;;  %v756_v10 = vsel %vm288_vm4, %v734_v59, 0.0 }
 0x3a9   :  { %v706_v11 = vrot.slane %v705_v2, 2  ;;  %v713_v12 = vrot.slane %v712_v7, 2  ;;  %v720_v3 = vrot.slane %v719_v8, 2  ;;  %v737_v13 = vadd.f32 %v736_v27, %v735_v60 }
 0x3aa   :  { %v727_v14 = vrot.slane %v726_v31, 2  ;;  %v744_v15 = vadd.f32 %v743_v33, %v742_v1  ;;  %v750_v16 = vrot.slane %v749_v9, 4  ;;  %v757_v28 = vrot.slane %v756_v10, 4 }
 0x3ab   :  { %v707_v32 = vadd.f32 %v706_v11, %v705_v2  ;;  %v714_v17 = vadd.f32 %v713_v12, %v712_v7  ;;  %v721_v37 = vadd.f32 %v720_v3, %v719_v8  ;;  %v738_v18 = vrot.slane %v737_v13, 2 }
 0x3ac   :  { %v728_v38 = vadd.f32 %v727_v14, %v726_v31  ;;  %v745_v25 = vrot.slane %v744_v15, 2  ;;  %v751_v26 = vadd.f32 %v750_v16, %v749_v9  ;;  %v758_v29 = vadd.f32 %v757_v28, %v756_v10 }
 0x3ad   :  { %v708_v30 = vrot.slane %v707_v32, 1  ;;  %v715_v34 = vrot.slane %v714_v17, 1  ;;  %v722_v36 = vrot.slane %v721_v37, 1  ;;  %v739_v39 = vadd.f32 %v738_v18, %v737_v13 }
 0x3ae   :  { %v729_v40 = vrot.slane %v728_v38, 1  ;;  %v746_v43 = vadd.f32 %v745_v25, %v744_v15  ;;  %v752_v44 = vrot.slane %v751_v26, 2  ;;  %v759_v45 = vrot.slane %v758_v29, 2 }
 0x3af   :  { %v709_v46 = vadd.f32 %v708_v30, %v707_v32  ;;  %v716_v54 = vadd.f32 %v715_v34, %v714_v17  ;;  %v723_v55 = vadd.f32 %v722_v36, %v721_v37  ;;  %v740_v56 = vrot.slane %v739_v39, 1 }
 0x3b0   :  { %v730_v57 = vadd.f32 %v729_v40, %v728_v38  ;;  %v747_v58 = vrot.slane %v746_v43, 1  ;;  %v753_v59 = vadd.f32 %v752_v44, %v751_v26  ;;  %v760_v60 = vadd.f32 %v759_v45, %v758_v29 }
 0x3b1   :  { %v741_v1 = vadd.f32 %v740_v56, %v739_v39  ;;  %v789_v2 = vsel %vm767_vm11, %v716_v54, %v709_v46  ;;  %v638_v7 = vmul.f32 %v1783_v35, %v1692_v63  ;;  %v639_v8 = vsel %vm288_vm4, %v1786_v19, 0.0 }
 0x3b2   :  { %v748_v27 = vadd.f32 %v747_v58, %v746_v43  ;;  %v754_v31 = vrot.slane %v753_v59, 1  ;;  %v761_v33 = vrot.slane %v760_v60, 1  ;;  %v790_v9 = vsel %vm769_vm12, %v723_v55, %v789_v2 }
 0x3b3   :  { %v791_v10 = vsel %vm771_vm13, %v730_v57, %v790_v9  ;;  %v640_v11 = vrot.slane %v639_v8, 4  ;;  %v646_v12 = vsel %vm288_vm4, %v1789_v20, 0.0  ;;  %v653_v3 = vsel %vm288_vm4, %v1792_v21, 0.0 }
 0x3b4   :  { %v755_v13 = vadd.f32 %v754_v31, %v753_v59  ;;  %v762_v14 = vadd.f32 %v761_v33, %v760_v60  ;;  %v797_v63 = vsel %vm778_vm14, %v748_v27, %v741_v1  ;;  %v647_v15 = vrot.slane %v646_v12, 4 }
 0x3b5   :  { %v641_v19 = vadd.f32 %v640_v11, %v639_v8  ;;  %v654_v16 = vrot.slane %v653_v3, 4  ;;  %v660_v28 = vsel %vm288_vm4, %v638_v7, 0.0  ;;  %v670_v32 = vmul.f32 %v1688_v61, %v1783_v35 }
 0x3b6   :  { %v798_v17 = vsel %vm780_vm15, %v755_v13, %v797_v63  ;;  %v648_v37 = vadd.f32 %v647_v15, %v646_v12  ;;  %v661_v18 = vrot.slane %v660_v28, 4  ;;  %v671_v20 = vsel %vm288_vm4, %v1795_v22, 0.0 }
 0x3b7   :  { %v799_v21 = vsel %vm782_vm0, %v762_v14, %v798_v17  ;;  %v642_v38 = vrot.slane %v641_v19, 2  ;;  %v655_v25 = vadd.f32 %v654_v16, %v653_v3  ;;  %v672_v26 = vrot.slane %v671_v20, 4 }
 0x3b8   :  { %v1869_v29 = vsel %vm254_vm5, %v791_v10, %v799_v21  ;;  %v649_v30 = vrot.slane %v648_v37, 2  ;;  %v662_v34 = vadd.f32 %v661_v18, %v660_v28  ;;  %v678_v61 = vsel %vm288_vm4, %v1798_v23, 0.0 }
 0x3b9   :  { %v643_v35 = vadd.f32 %v642_v38, %v641_v19  ;;  %v656_v36 = vrot.slane %v655_v25, 2  ;;  %v673_v39 = vadd.f32 %v672_v26, %v671_v20  ;;  %v679_v40 = vrot.slane %v678_v61, 4 }
 0x3ba   :  { %v650_v43 = vadd.f32 %v649_v30, %v648_v37  ;;  %v663_v44 = vrot.slane %v662_v34, 2  ;;  %v685_v22 = vsel %vm288_vm4, %v1801_v24, 0.0  ;;  %v692_v45 = vsel %vm288_vm4, %v670_v32, 0.0 }
 0x3bb   :  { %v644_v46 = vrot.slane %v643_v35, 1  ;;  %v657_v54 = vadd.f32 %v656_v36, %v655_v25  ;;  %v674_v55 = vrot.slane %v673_v39, 2  ;;  %v680_v56 = vadd.f32 %v679_v40, %v678_v61 }
 0x3bc   :  { %v651_v57 = vrot.slane %v650_v43, 1  ;;  %v664_v58 = vadd.f32 %v663_v44, %v662_v34  ;;  %v686_v59 = vrot.slane %v685_v22, 4  ;;  %v693_v60 = vrot.slane %v692_v45, 4 }
 0x3bd   :  { %v645_v23 = vadd.f32 %v644_v46, %v643_v35  ;;  %v658_v1 = vrot.slane %v657_v54, 1  ;;  %v675_v2 = vadd.f32 %v674_v55, %v673_v39  ;;  %v681_v7 = vrot.slane %v680_v56, 2 }
 0x3be   :  { %v652_v8 = vadd.f32 %v651_v57, %v650_v43  ;;  %v665_v27 = vrot.slane %v664_v58, 1  ;;  %v687_v31 = vadd.f32 %v686_v59, %v685_v22  ;;  %v694_v33 = vadd.f32 %v693_v60, %v692_v45 }
 0x3bf   :  { %v659_v9 = vadd.f32 %v658_v1, %v657_v54  ;;  %v676_v24 = vrot.slane %v675_v2, 1  ;;  %v682_v10 = vadd.f32 %v681_v7, %v680_v56  ;;  %v1150_v11 = vmul.f32 %v1809_v41, %v1708_v6 }
 0x3c0   :  { %v666_v12 = vadd.f32 %v665_v27, %v664_v58  ;;  %v688_v3 = vrot.slane %v687_v31, 2  ;;  %v695_v13 = vrot.slane %v694_v33, 2  ;;  %v768_v14 = vsel %vm767_vm11, %v652_v8, %v645_v23 }
 0x3c1   :  { %v677_v63 = vadd.f32 %v676_v24, %v675_v2  ;;  %v683_v15 = vrot.slane %v682_v10, 1  ;;  %v770_v19 = vsel %vm769_vm12, %v659_v9, %v768_v14  ;;  %v1151_v16 = vmul.f32 %v1811_v42, %v1708_v6 }
 0x3c2   :  { %v689_v28 = vadd.f32 %v688_v3, %v687_v31  ;;  %v696_v32 = vadd.f32 %v695_v13, %v694_v33  ;;  %v772_v17 = vsel %vm771_vm13, %v666_v12, %v770_v19  ;;  %v1152_v37 = vsel %vm288_vm4, %v1831_v5, 0.0 }
 0x3c3   :  { %v684_v18 = vadd.f32 %v683_v15, %v682_v10  ;;  %v1153_v20 = vrot.slane %v1152_v37, 4  ;;  %v1159_v21 = vsel %vm288_vm4, %v1834_v51, 0.0  ;;  %v1166_v38 = vsel %vm288_vm4, %v1150_v11, 0.0 }
 0x3c4   :  { %v690_v25 = vrot.slane %v689_v28, 1  ;;  %v697_v26 = vrot.slane %v696_v32, 1  ;;  %v1160_v30 = vrot.slane %v1159_v21, 4  ;;  %v1167_v34 = vrot.slane %v1166_v38, 4 }
 0x3c5   :  { %v779_v6 = vsel %vm778_vm14, %v684_v18, %v677_v63  ;;  %v1154_v61 = vadd.f32 %v1153_v20, %v1152_v37  ;;  %v1173_v35 = vsel %vm288_vm4, %v1151_v16, 0.0  ;;  %v1182_v36 = vmul.f32 %v1704_v4, %v1809_v41 }
 0x3c6   :  { %v691_v5 = vadd.f32 %v690_v25, %v689_v28  ;;  %v698_v39 = vadd.f32 %v697_v26, %v696_v32  ;;  %v1161_v40 = vadd.f32 %v1160_v30, %v1159_v21  ;;  %v1168_v43 = vadd.f32 %v1167_v34, %v1166_v38 }
 0x3c7   :  { %v1155_v44 = vrot.slane %v1154_v61, 2  ;;  %v1174_v51 = vrot.slane %v1173_v35, 4  ;;  %v1183_v22 = vmul.f32 %v1704_v4, %v1811_v42  ;;  %v1184_v45 = vsel %vm288_vm4, %v1837_v52, 0.0 }
 0x3c8   :  { %v781_v46 = vsel %vm780_vm15, %v691_v5, %v779_v6  ;;  %v1162_v54 = vrot.slane %v1161_v40, 2  ;;  %v1169_v55 = vrot.slane %v1168_v43, 2  ;;  %v1185_v56 = vrot.slane %v1184_v45, 4 }
 0x3c9   :  { %v783_v57 = vsel %vm782_vm0, %v698_v39, %v781_v46  ;;  %v1156_v58 = vadd.f32 %v1155_v44, %v1154_v61  ;;  %v1175_v59 = vadd.f32 %v1174_v51, %v1173_v35  ;;  %v1191_v60 = vsel %vm288_vm4, %v1840_v53, 0.0 }
 0x3ca   :  { %v1901_v23 = vsel %vm254_vm5, %v772_v17, %v783_v57  ;;  %v1163_v1 = vadd.f32 %v1162_v54, %v1161_v40  ;;  %v1170_v4 = vadd.f32 %v1169_v55, %v1168_v43  ;;  %v1186_v2 = vadd.f32 %v1185_v56, %v1184_v45 }
 0x3cb   :  { %v1157_v7 = vrot.slane %v1156_v58, 1  ;;  %v1176_v52 = vrot.slane %v1175_v59, 2  ;;  %v1192_v8 = vrot.slane %v1191_v60, 4  ;;  %v1198_v27 = vsel %vm288_vm4, %v1182_v36, 0.0 }
 0x3cc   :  { %v1164_v31 = vrot.slane %v1163_v1, 1  ;;  %v1171_v33 = vrot.slane %v1170_v4, 1  ;;  %v1187_v9 = vrot.slane %v1186_v2, 2  ;;  %v1199_v24 = vrot.slane %v1198_v27, 4 }
 0x3cd   :  { %v1158_v10 = vadd.f32 %v1157_v7, %v1156_v58  ;;  %v1177_v11 = vadd.f32 %v1176_v52, %v1175_v59  ;;  %v1193_v12 = vadd.f32 %v1192_v8, %v1191_v60  ;;  %v1205_v53 = vsel %vm288_vm4, %v1183_v22, 0.0 }
 0x3ce   :  { %v1165_v3 = vadd.f32 %v1164_v31, %v1163_v1  ;;  %v1172_v13 = vadd.f32 %v1171_v33, %v1170_v4  ;;  %v1188_v14 = vadd.f32 %v1187_v9, %v1186_v2  ;;  %v1200_v63 = vadd.f32 %v1199_v24, %v1198_v27 }
 0x3cf   :  { %v1178_v15 = vrot.slane %v1177_v11, 1  ;;  %v1194_v19 = vrot.slane %v1193_v12, 2  ;;  %v1206_v16 = vrot.slane %v1205_v53, 4  ;;  %v1086_v28 = vmul.f32 %v1809_v41, %v1694_v0 }
 0x3d0   :  { %v1189_v32 = vrot.slane %v1188_v14, 1  ;;  %v1201_v17 = vrot.slane %v1200_v63, 2  ;;  %v1232_v37 = vsel %vm767_vm11, %v1165_v3, %v1158_v10  ;;  %v1087_v18 = vmul.f32 %v1811_v42, %v1694_v0 }
 0x3d1   :  { %v1179_v20 = vadd.f32 %v1178_v15, %v1177_v11  ;;  %v1195_v21 = vadd.f32 %v1194_v19, %v1193_v12  ;;  %v1207_v38 = vadd.f32 %v1206_v16, %v1205_v53  ;;  %v1233_v25 = vsel %vm769_vm12, %v1172_v13, %v1232_v37 }
 0x3d2   :  { %v1190_v26 = vadd.f32 %v1189_v32, %v1188_v14  ;;  %v1202_v30 = vadd.f32 %v1201_v17, %v1200_v63  ;;  %v1088_v34 = vsel %vm288_vm4, %v1819_v47, 0.0  ;;  %v1095_v6 = vsel %vm288_vm4, %v1822_v48, 0.0 }
 0x3d3   :  { %v1196_v61 = vrot.slane %v1195_v21, 1  ;;  %v1208_v35 = vrot.slane %v1207_v38, 2  ;;  %v1234_v36 = vsel %vm771_vm13, %v1179_v20, %v1233_v25  ;;  %v1089_v5 = vrot.slane %v1088_v34, 4 }
 0x3d4   :  { %v1203_v39 = vrot.slane %v1202_v30, 1  ;;  %v1096_v0 = vrot.slane %v1095_v6, 4  ;;  %v1102_v40 = vsel %vm288_vm4, %v1086_v28, 0.0  ;;  %v1109_v43 = vsel %vm288_vm4, %v1087_v18, 0.0 }
 0x3d5   :  { %v1197_v44 = vadd.f32 %v1196_v61, %v1195_v21  ;;  %v1209_v51 = vadd.f32 %v1208_v35, %v1207_v38  ;;  %v1090_v22 = vadd.f32 %v1089_v5, %v1088_v34  ;;  %v1103_v45 = vrot.slane %v1102_v40, 4 }
 0x3d6   :  { %v1204_v46 = vadd.f32 %v1203_v39, %v1202_v30  ;;  %v1097_v47 = vadd.f32 %v1096_v0, %v1095_v6  ;;  %v1110_v54 = vrot.slane %v1109_v43, 4  ;;  %v1118_v48 = vmul.f32 %v1690_v62, %v1809_v41 }
 0x3d7   :  { %v1210_v55 = vrot.slane %v1209_v51, 1  ;;  %v1240_v56 = vsel %vm778_vm14, %v1197_v44, %v1190_v26  ;;  %v1091_v57 = vrot.slane %v1090_v22, 2  ;;  %v1104_v58 = vadd.f32 %v1103_v45, %v1102_v40 }
 0x3d8   :  { %v1241_v59 = vsel %vm780_vm15, %v1204_v46, %v1240_v56  ;;  %v1098_v60 = vrot.slane %v1097_v47, 2  ;;  %v1111_v1 = vadd.f32 %v1110_v54, %v1109_v43  ;;  %v1119_v4 = vmul.f32 %v1690_v62, %v1811_v42 }
 0x3d9   :  { %v1211_v2 = vadd.f32 %v1210_v55, %v1209_v51  ;;  %v1092_v7 = vadd.f32 %v1091_v57, %v1090_v22  ;;  %v1105_v52 = vrot.slane %v1104_v58, 2  ;;  %v1120_v8 = vsel %vm288_vm4, %v1825_v49, 0.0 }
 0x3da   :  { %v1099_v27 = vadd.f32 %v1098_v60, %v1097_v47  ;;  %v1112_v41 = vrot.slane %v1111_v1, 2  ;;  %v1121_v31 = vrot.slane %v1120_v8, 4  ;;  %v1127_v33 = vsel %vm288_vm4, %v1828_v50, 0.0 }
 0x3db   :  { %v1242_v9 = vsel %vm782_vm0, %v1211_v2, %v1241_v59  ;;  %v1093_v24 = vrot.slane %v1092_v7, 1  ;;  %v1106_v10 = vadd.f32 %v1105_v52, %v1104_v58  ;;  %v1128_v11 = vrot.slane %v1127_v33, 4 }
 0x3dc   :  { %v1245_v12 = vsel %vm254_vm5, %v1234_v36, %v1242_v9  ;;  %v1100_v62 = vrot.slane %v1099_v27, 1  ;;  %v1113_v42 = vadd.f32 %v1112_v41, %v1111_v1  ;;  %v1122_v53 = vadd.f32 %v1121_v31, %v1120_v8 }
 0x3dd   :  { %v1094_v3 = vadd.f32 %v1093_v24, %v1092_v7  ;;  %v1107_v13 = vrot.slane %v1106_v10, 1  ;;  %v1129_v14 = vadd.f32 %v1128_v11, %v1127_v33  ;;  %v1134_v49 = vsel %vm288_vm4, %v1118_v48, 0.0 }
 0x3de   :  { %v1101_v63 = vadd.f32 %v1100_v62, %v1099_v27  ;;  %v1114_v15 = vrot.slane %v1113_v42, 1  ;;  %v1123_v19 = vrot.slane %v1122_v53, 2  ;;  %v1135_v16 = vrot.slane %v1134_v49, 4 }
 0x3df   :  { %v1108_v50 = vadd.f32 %v1107_v13, %v1106_v10  ;;  %v1130_v28 = vrot.slane %v1129_v14, 2  ;;  %v1141_v32 = vsel %vm288_vm4, %v1119_v4, 0.0 }
 0x3e0   :  { %v1124_v17 = vadd.f32 %v1123_v19, %v1122_v53  ;;  %v1136_v37 = vadd.f32 %v1135_v16, %v1134_v49  ;;  %v1142_v18 = vrot.slane %v1141_v32, 4  ;;  %v1115_v20 = vadd.f32 %v1114_v15, %v1113_v42 }
 0x3e1   :  { %v1131_v21 = vadd.f32 %v1130_v28, %v1129_v14  ;;  %v1216_v38 = vsel %vm767_vm11, %v1101_v63, %v1094_v3 }
 0x3e2   :  { %v1125_v25 = vrot.slane %v1124_v17, 1  ;;  %v1137_v26 = vrot.slane %v1136_v37, 2  ;;  %v1143_v30 = vadd.f32 %v1142_v18, %v1141_v32  ;;  %v1217_v34 = vsel %vm769_vm12, %v1108_v50, %v1216_v38 }
 0x3e3   :  { %v1132_v6 = vrot.slane %v1131_v21, 1  ;;  %v1218_v61 = vsel %vm771_vm13, %v1115_v20, %v1217_v34 }
 0x3e4   :  { %v1126_v35 = vadd.f32 %v1125_v25, %v1124_v17  ;;  %v1138_v36 = vadd.f32 %v1137_v26, %v1136_v37  ;;  %v1144_v5 = vrot.slane %v1143_v30, 2 }
 0x3e5   :  { %v1133_v39 = vadd.f32 %v1132_v6, %v1131_v21 }
 0x3e6   :  { %v1139_v0 = vrot.slane %v1138_v36, 1  ;;  %v1145_v40 = vadd.f32 %v1144_v5, %v1143_v30 }
 0x3e7   :  { %v1224_v43 = vsel %vm778_vm14, %v1133_v39, %v1126_v35 }
 0x3e8   :  { %v1140_v44 = vadd.f32 %v1139_v0, %v1138_v36  ;;  %v1146_v51 = vrot.slane %v1145_v40, 1 }
 0x3ea   :  { %v1147_v22 = vadd.f32 %v1146_v51, %v1145_v40  ;;  %v1225_v45 = vsel %vm780_vm15, %v1140_v44, %v1224_v43 }
 0x3ec   :  { %v1226_v46 = vsel %vm782_vm0, %v1147_v22, %v1225_v45 }
 0x3ed   :  { %v1244_v47 = vsel %vm254_vm5, %v1218_v61, %v1226_v46 }
 0x45b   :  { %v1445_v54 = vpop.f32.mrb[10].mxu1 }
 0x45c   :  { %v882_v48 = vadd.f32 %v1445_v54, %v1869_v29  ;;  %v876_v55 = vpop.f32.mrb[11].mxu1 }
 0x45d   :  { %v877_v56 = vadd.f32 %v876_v55, %v1901_v23 }
 0x45e   :  { %886 = vst.msk [vmem:[#allocation5 + $0x8] sm:$0xff] %vm288_vm4, %v882_v48 }
 0x45f   :  { %885 = vst.msk [vmem:[#allocation5] sm:$0xff] %vm288_vm4, %v877_v56 }
 0x462   :  { %v1461_v57 = vpop.f32.mrb[10].mxu0 }
 0x463   :  { %v1324_v58 = vadd.f32 %v1461_v57, %v1245_v12  ;;  %v1318_v59 = vpop.f32.mrb[11].mxu0 }
 0x464   :  { %v1319_v60 = vadd.f32 %v1318_v59, %v1244_v47 }
 0x465   :  { %1329 = vst.msk [vmem:[#allocation5 + $0x18] sm:$0xff] %vm288_vm4, %v1324_v58 }
 0x466   :  { %1328 = vst.msk [vmem:[#allocation5 + $0x10] sm:$0xff] %vm288_vm4, %v1319_v60 }
 0x467   :  { %1578 = shalt.err (!%p1575_p12)
}
 0x468   :  { %s1579_s21 = scalar_lea.hbm %s1961_s3, 512 }
 0x469   :  { %p1580_p13 = scmp.ne.s32.totalorder %s1961_s3, %s1579_s21  ;;  %p1583_p0 = scmp.lt.u32.totalorder %s1579_s21, %s1961_s3 }
 0x46b   :  { %p1585_p1 = pnand %p1583_p0, %p1580_p13 }
 0x46d   :  { %1588 = shalt.err (!%p1585_p1)
}
 0x46e   :  { %s1607_s26 = smov 128  }
 0x46f   :  { %1341 = dma.vmem_to_hbm [thread:$0]  %s1336_s17, 512, %s1961_s3, [#allocation4], %s1607_s26, %s1607_s26, %s1600_s1  }
 0x470   :  { %1591 = dma.done.wait [#allocation4], 512  }
 0x471   :  { %1592 = vsyncadd [#allocation4], 4294966784 }
 0x472   :  { %1345 = vsyncpa [#allocation3], 1 }
 0x473   :  { %1346 = vsyncpa [#allocation4], 1 }

</bundles_post_ra>
